<compile_context>
chip_gen: v7x
topology: tpu7x:2x2x1
jax: 0.10.0
libtpu: 0.0.40
codegen_flags: <defaults>
</compile_context>

<pallas_src>
import functools

import jax
import jax.numpy as jnp
from jax.experimental import pallas as pl
from jax.experimental.pallas import tpu as pltpu

BN_EPS = 1e-5


# ----------------------------- Pallas kernels -----------------------------

def _conv_stats_kernel(p_ref, w_ref, y_ref, stats_ref, acc_ref):
    """Tiled matmul (conv via im2col) + per-tile partial BN statistics."""
    k = pl.program_id(1)

    @pl.when(k == 0)
    def _():
        acc_ref[...] = jnp.zeros_like(acc_ref)

    # bf16 x bf16 -> f32 accumulation on the MXU.
    acc_ref[...] += jnp.dot(p_ref[...], w_ref[...],
                            preferred_element_type=jnp.float32)

    @pl.when(k == pl.num_programs(1) - 1)
    def _():
        y = acc_ref[...]
        y_ref[...] = y.astype(y_ref.dtype)
        s = jnp.sum(y, axis=0, keepdims=True)        # (1, Cout_p)
        ss = jnp.sum(y * y, axis=0, keepdims=True)   # (1, Cout_p)
        stats_ref[...] = jnp.concatenate([s, ss], axis=0).reshape(stats_ref.shape)


def _make_bn_act_kernel(apply_relu: bool, add_residual: bool):
    """Normalize + affine [+ residual add] [+ ReLU] on a row tile."""
    def kernel(*refs):
        if add_residual:
            y_ref, scale_ref, shift_ref, res_ref, o_ref = refs
        else:
            y_ref, scale_ref, shift_ref, o_ref = refs
        out = y_ref[...] * scale_ref[...] + shift_ref[...]
        if add_residual:
            out = out + res_ref[...].astype(jnp.float32)
        if apply_relu:
            out = jnp.maximum(out, 0.0)
        o_ref[...] = out.astype(o_ref.dtype)
    return kernel


# ----------------------------- helpers (layout only) -----------------------------

def _round_up(x, m):
    return ((x + m - 1) // m) * m


def _pick_k_tile(k_pad):
    for c in (512, 384, 256, 128):
        if k_pad % c == 0:
            return c
    return 128


def _im2col(x_nhwc, kh, kw, stride, padding):
    N, H, W, C = x_nhwc.shape
    xp = jnp.pad(x_nhwc, ((0, 0), (padding, padding), (padding, padding), (0, 0)))
    Ho = (H + 2 * padding - kh) // stride + 1
    Wo = (W + 2 * padding - kw) // stride + 1
    cols = []
    for i in range(kh):
        for j in range(kw):
            cols.append(xp[:, i:i + (Ho - 1) * stride + 1:stride,
                             j:j + (Wo - 1) * stride + 1:stride, :])
    patches = jnp.concatenate(cols, axis=-1)          # (N, Ho, Wo, kh*kw*C)
    return patches.reshape(N * Ho * Wo, kh * kw * C), (N, Ho, Wo)


# ----------------------------- fused conv + BN (+res +relu) -----------------------------

def conv_bn_pallas(x_nhwc, w_oihw, gamma, beta, *, stride, padding, relu,
                   residual=None, out_dtype=jnp.bfloat16):
    Cout, Cin, KH, KW = w_oihw.shape
    patches, (N, Ho, Wo) = _im2col(x_nhwc, KH, KW, stride, padding)
    M, K = patches.shape

    # Lane/sublane-friendly padded shapes.
    Cout_p = _round_up(Cout, 128)
    K_pad = _round_up(K, 128)
    tm = min(512, _round_up(M, 8))
    M_pad = _round_up(M, tm)
    tk = _pick_k_tile(K_pad)
    num_m = M_pad // tm
    num_k = K_pad // tk

    # Matmul operands in bf16 (MXU fast path); padded rows/cols are zero so they
    # contribute nothing to the BN statistics.
    patches_p = jnp.pad(patches, ((0, M_pad - M), (0, K_pad - K))).astype(jnp.bfloat16)
    w2d = jnp.transpose(w_oihw, (2, 3, 1, 0)).reshape(K, Cout)
    w2d_p = jnp.pad(w2d, ((0, K_pad - K), (0, Cout_p - Cout))).astype(jnp.bfloat16)

    # ---- pass 1: tiled conv matmul + per-tile partial statistics ----
    y, stats = pl.pallas_call(
        _conv_stats_kernel,
        out_shape=(jax.ShapeDtypeStruct((M_pad, Cout_p), jnp.float32),
                   jax.ShapeDtypeStruct((num_m, 2, Cout_p), jnp.float32)),
        grid_spec=pltpu.PrefetchScalarGridSpec(
            num_scalar_prefetch=0,
            grid=(num_m, num_k),
            in_specs=[pl.BlockSpec((tm, tk), lambda m, k: (m, k)),
                      pl.BlockSpec((tk, Cout_p), lambda m, k: (k, 0))],
            out_specs=(pl.BlockSpec((tm, Cout_p), lambda m, k: (m, 0)),
                       pl.BlockSpec((1, 2, Cout_p), lambda m, k: (m, 0, 0))),
            scratch_shapes=[pltpu.VMEM((tm, Cout_p), jnp.float32)]),
        compiler_params=pltpu.CompilerParams(
            dimension_semantics=("parallel", "arbitrary")),
        cost_estimate=pl.CostEstimate(
            flops=2 * M_pad * K_pad * Cout_p,
            transcendentals=0,
            bytes_accessed=(patches_p.size * 2 + w2d_p.size * 2
                            + M_pad * Cout_p * 4)),
    )(patches_p, w2d_p)

    # ---- global BN statistics (training-mode, biased var) and affine fold ----
    total = jnp.sum(stats, axis=0)                     # (2, Cout_p)
    mean = total[0] / M
    var = jnp.maximum(total[1] / M - mean * mean, 0.0)
    inv = jax.lax.rsqrt(var + BN_EPS)
    gamma_p = jnp.pad(gamma.astype(jnp.float32), (0, Cout_p - Cout))
    beta_p = jnp.pad(beta.astype(jnp.float32), (0, Cout_p - Cout))
    scale = (gamma_p * inv).reshape(1, Cout_p)
    shift = (beta_p - mean * gamma_p * inv).reshape(1, Cout_p)

    # ---- pass 2: tiled normalize + affine [+ residual] [+ ReLU] ----
    args = [y, scale, shift]
    in_specs = [pl.BlockSpec((tm, Cout_p), lambda m: (m, 0)),
                pl.BlockSpec((1, Cout_p), lambda m: (0, 0)),
                pl.BlockSpec((1, Cout_p), lambda m: (0, 0))]
    if residual is not None:
        res2d = residual.reshape(M, Cout)
        res_p = jnp.pad(res2d, ((0, M_pad - M), (0, Cout_p - Cout)))
        args.append(res_p)
        in_specs.append(pl.BlockSpec((tm, Cout_p), lambda m: (m, 0)))

    out = pl.pallas_call(
        _make_bn_act_kernel(relu, residual is not None),
        out_shape=jax.ShapeDtypeStruct((M_pad, Cout_p), out_dtype),
        grid_spec=pltpu.PrefetchScalarGridSpec(
            num_scalar_prefetch=0,
            grid=(num_m,),
            in_specs=in_specs,
            out_specs=pl.BlockSpec((tm, Cout_p), lambda m: (m, 0))),
        compiler_params=pltpu.CompilerParams(
            dimension_semantics=("parallel",)),
    )(*args)

    return out[:M, :Cout].reshape(N, Ho, Wo, Cout)


# ----------------------------- parameters & module forward -----------------------------

def _kaiming_normal_fan_out(key, shape):
    # nn.init.kaiming_normal_(w, mode='fan_out', nonlinearity='relu')
    cout, _, kh, kw = shape
    fan_out = cout * kh * kw
    std = (2.0 / fan_out) ** 0.5
    return std * jax.random.normal(key, shape, dtype=jnp.float32)


def init_residual_block(key, in_feats, out_feats, first_stride):
    keys = jax.random.split(key, 3)
    p = {
        "w1": _kaiming_normal_fan_out(keys[0], (out_feats, in_feats, 3, 3)),
        "g1": jnp.ones((out_feats,), jnp.float32),
        "b1": jnp.zeros((out_feats,), jnp.float32),
        "w2": _kaiming_normal_fan_out(keys[1], (out_feats, out_feats, 3, 3)),
        "g2": jnp.ones((out_feats,), jnp.float32),
        "b2": jnp.zeros((out_feats,), jnp.float32),
    }
    if first_stride != 1:
        p["wsc"] = _kaiming_normal_fan_out(keys[2], (out_feats, in_feats, 1, 1))
        p["gsc"] = jnp.ones((out_feats,), jnp.float32)
        p["bsc"] = jnp.zeros((out_feats,), jnp.float32)
    return p


def residual_block_forward(x_nhwc, p, first_stride):
    # left branch, first half: conv3x3(stride s) + BN + ReLU
    h = conv_bn_pallas(x_nhwc, p["w1"], p["g1"], p["b1"],
                       stride=first_stride, padding=1, relu=True)
    # right branch (shortcut)
    if first_stride == 1:
        r = x_nhwc
    else:
        r = conv_bn_pallas(x_nhwc, p["wsc"], p["gsc"], p["bsc"],
                           stride=first_stride, padding=0, relu=False)
    # left second half fused with residual add and final ReLU
    return conv_bn_pallas(h, p["w2"], p["g2"], p["b2"],
                          stride=1, padding=1, relu=True, residual=r)


def init_block_group(key, n_blocks, in_feats, out_feats, first_stride):
    keys = jax.random.split(key, n_blocks)
    params = [init_residual_block(keys[0], in_feats, out_feats, first_stride)]
    strides = [first_stride]
    for i in range(1, n_blocks):
        params.append(init_residual_block(keys[i], out_feats, out_feats, 1))
        strides.append(1)
    return params, strides


def make_block_group_forward(strides):
    """strides is static Python config; params is a pytree of arrays -> jit-able."""
    def fwd(x_nchw, params):
        x = jnp.transpose(x_nchw, (0, 2, 3, 1))   # NCHW -> NHWC for the kernels
        for p, s in zip(params, strides):
            x = residual_block_forward(x, p, s)
        return jnp.transpose(x, (0, 3, 1, 2)).astype(jnp.float32)  # back to NCHW
    return jax.jit(fwd)


if __name__ == "__main__":
    key = jax.random.PRNGKey(0)
    kx, kp = jax.random.split(key)

    n_blocks, in_feats, out_feats, first_stride = 2, 4, 8, 2
    x = jax.random.normal(kx, (2, in_feats, 16, 16), dtype=jnp.float32)

    params, strides = init_block_group(kp, n_blocks, in_feats, out_feats, first_stride)
    fwd = make_block_group_forward(strides)
    out = jax.block_until_ready(fwd(x, params))

    assert out.shape == (2, out_feats, 8, 8), out.shape
    assert bool(jnp.all(jnp.isfinite(out)))
    print("KERNEL_OK")
</pallas_src>

<mosaic_0001>
module attributes {stable_mosaic.version = 11 : i64} {
  func.func @_conv_stats_kernel(%arg0: i32, %arg1: i32, %arg2: memref<128x128xbf16, #tpu.memory_space<vmem>>, %arg3: memref<128x128xbf16, #tpu.memory_space<vmem>>, %arg4: memref<128x128xf32, #tpu.memory_space<vmem>>, %arg5: memref<1x2x128xf32, #tpu.memory_space<vmem>>, %arg6: memref<128x128xf32, #tpu.memory_space<vmem>>) attributes {dimension_semantics = [#tpu.dimension_semantics<parallel>, #tpu.dimension_semantics<arbitrary>], iteration_bounds = array<i64: 1, 1>, scalar_prefetch = 0 : i64, scratch_operands = 1 : i64, tpu.core_type = #tpu.core_type<tc>, window_params = [{transform_indices = @transform_0, window_bounds = array<i64: 128, 128>}, {transform_indices = @transform_1, window_bounds = array<i64: 128, 128>}, {transform_indices = @transform_2, window_bounds = array<i64: 128, 128>}, {transform_indices = @transform_3, window_bounds = array<i64: 1, 2, 128>}]} {
    %c0_i32 = arith.constant 0 : i32
    %0 = arith.cmpi eq, %arg1, %c0_i32 : i32
    %1 = arith.extui %0 : i1 to i32
    %c0_i32_0 = arith.constant 0 : i32
    %2 = arith.cmpi ne, %1, %c0_i32_0 : i32
    scf.if %2 {
      %cst_10 = arith.constant 0.000000e+00 : f32
      %12 = vector.broadcast %cst_10 : f32 to vector<128x128xf32>
      %c0_11 = arith.constant 0 : index
      %c0_12 = arith.constant 0 : index
      %13 = vector.load %arg6[%c0_11, %c0_12] : memref<128x128xf32, #tpu.memory_space<vmem>>, vector<128x128xf32>
      tpu.vector_store %arg6[%c0_11, %c0_12], %12 {strides = array<i32>} : memref<128x128xf32, #tpu.memory_space<vmem>>, vector<128x128xf32>,
    } else {
    }
    %c0 = arith.constant 0 : index
    %c0_1 = arith.constant 0 : index
    %3 = vector.load %arg6[%c0, %c0_1] : memref<128x128xf32, #tpu.memory_space<vmem>>, vector<128x128xf32>
    %c0_2 = arith.constant 0 : index
    %c0_3 = arith.constant 0 : index
    %4 = vector.load %arg2[%c0_2, %c0_3] : memref<128x128xbf16, #tpu.memory_space<vmem>>, vector<128x128xbf16>
    %c0_4 = arith.constant 0 : index
    %c0_5 = arith.constant 0 : index
    %5 = vector.load %arg3[%c0_4, %c0_5] : memref<128x128xbf16, #tpu.memory_space<vmem>>, vector<128x128xbf16>
    %cst = arith.constant dense<0.000000e+00> : vector<128x128xf32>
    %6 = tpu.matmul %4, %5, %cst {dimension_numbers = #tpu.dot_dimension_numbers<[1], [0], [0], [1], [0, 0, 1, 1], [], []>} : vector<128x128xbf16>, vector<128x128xbf16>, vector<128x128xf32> -> vector<128x128xf32>
    %7 = arith.addf %3, %6 : vector<128x128xf32>
    %c0_6 = arith.constant 0 : index
    %c0_7 = arith.constant 0 : index
    %8 = vector.load %arg6[%c0_6, %c0_7] : memref<128x128xf32, #tpu.memory_space<vmem>>, vector<128x128xf32>
    tpu.vector_store %arg6[%c0_6, %c0_7], %7 {strides = array<i32>} : memref<128x128xf32, #tpu.memory_space<vmem>>, vector<128x128xf32>,
    %c0_i32_8 = arith.constant 0 : i32
    %9 = arith.cmpi eq, %arg1, %c0_i32_8 : i32
    %10 = arith.extui %9 : i1 to i32
    %c0_i32_9 = arith.constant 0 : i32
    %11 = arith.cmpi ne, %10, %c0_i32_9 : i32
    scf.if %11 {
      %c0_10 = arith.constant 0 : index
      %c0_11 = arith.constant 0 : index
      %12 = vector.load %arg6[%c0_10, %c0_11] : memref<128x128xf32, #tpu.memory_space<vmem>>, vector<128x128xf32>
      %c0_12 = arith.constant 0 : index
      %c0_13 = arith.constant 0 : index
      %13 = vector.load %arg4[%c0_12, %c0_13] : memref<128x128xf32, #tpu.memory_space<vmem>>, vector<128x128xf32>
      tpu.vector_store %arg4[%c0_12, %c0_13], %12 {strides = array<i32>} : memref<128x128xf32, #tpu.memory_space<vmem>>, vector<128x128xf32>,
      %cst_14 = arith.constant dense<0.000000e+00> : vector<128xf32>
      %14 = vector.multi_reduction <add>, %12, %cst_14 [0] : vector<128x128xf32> to vector<128xf32>
      %15 = vector.shape_cast %14 : vector<128xf32> to vector<1x128xf32>
      %16 = arith.mulf %12, %12 : vector<128x128xf32>
      %cst_15 = arith.constant dense<0.000000e+00> : vector<128xf32>
      %17 = vector.multi_reduction <add>, %16, %cst_15 [0] : vector<128x128xf32> to vector<128xf32>
      %18 = vector.shape_cast %17 : vector<128xf32> to vector<1x128xf32>
      %19 = tpu.concatenate %15, %18 in 0 : vector<1x128xf32>, vector<1x128xf32> -> vector<2x128xf32>
      %20 = vector.shape_cast %19 : vector<2x128xf32> to vector<1x2x128xf32>
      %c0_16 = arith.constant 0 : index
      %c0_17 = arith.constant 0 : index
      %c0_18 = arith.constant 0 : index
      %21 = vector.load %arg5[%c0_16, %c0_17, %c0_18] : memref<1x2x128xf32, #tpu.memory_space<vmem>>, vector<1x2x128xf32>
      tpu.vector_store %arg5[%c0_16, %c0_17, %c0_18], %20 {strides = array<i32>} : memref<1x2x128xf32, #tpu.memory_space<vmem>>, vector<1x2x128xf32>,
    } else {
    }
    return
  }
  func.func @transform_0(%arg0: i32, %arg1: i32) -> (i32, i32) {
    %c0_i32 = arith.constant 0 : i32
    return %arg0, %arg1 : i32, i32
  }
  func.func @transform_1(%arg0: i32, %arg1: i32) -> (i32, i32) {
    %c0_i32 = arith.constant 0 : i32
    %c0_i32_0 = arith.constant 0 : i32
    return %arg1, %c0_i32 : i32, i32
  }
  func.func @transform_2(%arg0: i32, %arg1: i32) -> (i32, i32) {
    %c0_i32 = arith.constant 0 : i32
    %c0_i32_0 = arith.constant 0 : i32
    return %arg0, %c0_i32 : i32, i32
  }
  func.func @transform_3(%arg0: i32, %arg1: i32) -> (i32, i32, i32) {
    %c0_i32 = arith.constant 0 : i32
    %c0_i32_0 = arith.constant 0 : i32
    %c0_i32_1 = arith.constant 0 : i32
    return %arg0, %c0_i32, %c0_i32_0 : i32, i32, i32
  }
}

module attributes {stable_mosaic.version = 11 : i64} {
  func.func @kernel(%arg0: i32, %arg1: memref<128x128xf32, #tpu.memory_space<vmem>>, %arg2: memref<1x128xf32, #tpu.memory_space<vmem>>, %arg3: memref<1x128xf32, #tpu.memory_space<vmem>>, %arg4: memref<128x128xbf16, #tpu.memory_space<vmem>>) attributes {dimension_semantics = [#tpu.dimension_semantics<parallel>], iteration_bounds = array<i64: 1>, scalar_prefetch = 0 : i64, scratch_operands = 0 : i64, tpu.core_type = #tpu.core_type<tc>, window_params = [{transform_indices = @transform_0, window_bounds = array<i64: 128, 128>}, {pipeline_mode = #tpu.pipeline_mode<synchronous>, transform_indices = @transform_1, window_bounds = array<i64: 1, 128>}, {pipeline_mode = #tpu.pipeline_mode<synchronous>, transform_indices = @transform_2, window_bounds = array<i64: 1, 128>}, {transform_indices = @transform_3, window_bounds = array<i64: 128, 128>}]} {
    %c0 = arith.constant 0 : index
    %c0_0 = arith.constant 0 : index
    %0 = vector.load %arg1[%c0, %c0_0] : memref<128x128xf32, #tpu.memory_space<vmem>>, vector<128x128xf32>
    %c0_1 = arith.constant 0 : index
    %c0_2 = arith.constant 0 : index
    %1 = vector.load %arg2[%c0_1, %c0_2] : memref<1x128xf32, #tpu.memory_space<vmem>>, vector<1x128xf32>
    %2 = vector.broadcast %1 : vector<1x128xf32> to vector<128x128xf32>
    %3 = arith.mulf %0, %2 : vector<128x128xf32>
    %c0_3 = arith.constant 0 : index
    %c0_4 = arith.constant 0 : index
    %4 = vector.load %arg3[%c0_3, %c0_4] : memref<1x128xf32, #tpu.memory_space<vmem>>, vector<1x128xf32>
    %5 = vector.broadcast %4 : vector<1x128xf32> to vector<128x128xf32>
    %6 = arith.addf %3, %5 : vector<128x128xf32>
    %cst = arith.constant 0.000000e+00 : f32
    %7 = vector.broadcast %cst : f32 to vector<128x128xf32>
    %8 = arith.maximumf %6, %7 : vector<128x128xf32>
    %9 = arith.truncf %8 : vector<128x128xf32> to vector<128x128xbf16>
    %c0_5 = arith.constant 0 : index
    %c0_6 = arith.constant 0 : index
    %10 = vector.load %arg4[%c0_5, %c0_6] : memref<128x128xbf16, #tpu.memory_space<vmem>>, vector<128x128xbf16>
    tpu.vector_store %arg4[%c0_5, %c0_6], %9 {strides = array<i32>} : memref<128x128xbf16, #tpu.memory_space<vmem>>, vector<128x128xbf16>,
    return
  }
  func.func @transform_0(%arg0: i32) -> (i32, i32) {
    %c0_i32 = arith.constant 0 : i32
    %c0_i32_0 = arith.constant 0 : i32
    return %arg0, %c0_i32 : i32, i32
  }
  func.func @transform_1(%arg0: i32) -> (i32, i32) {
    %c0_i32 = arith.constant 0 : i32
    %c0_i32_0 = arith.constant 0 : i32
    %c0_i32_1 = arith.constant 0 : i32
    return %c0_i32, %c0_i32_0 : i32, i32
  }
  func.func @transform_2(%arg0: i32) -> (i32, i32) {
    %c0_i32 = arith.constant 0 : i32
    %c0_i32_0 = arith.constant 0 : i32
    %c0_i32_1 = arith.constant 0 : i32
    return %c0_i32, %c0_i32_0 : i32, i32
  }
  func.func @transform_3(%arg0: i32) -> (i32, i32) {
    %c0_i32 = arith.constant 0 : i32
    %c0_i32_0 = arith.constant 0 : i32
    return %arg0, %c0_i32 : i32, i32
  }
}

module attributes {stable_mosaic.version = 11 : i64} {
  func.func @kernel(%arg0: i32, %arg1: memref<128x128xf32, #tpu.memory_space<vmem>>, %arg2: memref<1x128xf32, #tpu.memory_space<vmem>>, %arg3: memref<1x128xf32, #tpu.memory_space<vmem>>, %arg4: memref<128x128xbf16, #tpu.memory_space<vmem>>, %arg5: memref<128x128xbf16, #tpu.memory_space<vmem>>) attributes {dimension_semantics = [#tpu.dimension_semantics<parallel>], iteration_bounds = array<i64: 1>, scalar_prefetch = 0 : i64, scratch_operands = 0 : i64, tpu.core_type = #tpu.core_type<tc>, window_params = [{transform_indices = @transform_0, window_bounds = array<i64: 128, 128>}, {pipeline_mode = #tpu.pipeline_mode<synchronous>, transform_indices = @transform_1, window_bounds = array<i64: 1, 128>}, {pipeline_mode = #tpu.pipeline_mode<synchronous>, transform_indices = @transform_2, window_bounds = array<i64: 1, 128>}, {transform_indices = @transform_3, window_bounds = array<i64: 128, 128>}, {transform_indices = @transform_4, window_bounds = array<i64: 128, 128>}]} {
    %c0 = arith.constant 0 : index
    %c0_0 = arith.constant 0 : index
    %0 = vector.load %arg1[%c0, %c0_0] : memref<128x128xf32, #tpu.memory_space<vmem>>, vector<128x128xf32>
    %c0_1 = arith.constant 0 : index
    %c0_2 = arith.constant 0 : index
    %1 = vector.load %arg2[%c0_1, %c0_2] : memref<1x128xf32, #tpu.memory_space<vmem>>, vector<1x128xf32>
    %2 = vector.broadcast %1 : vector<1x128xf32> to vector<128x128xf32>
    %3 = arith.mulf %0, %2 : vector<128x128xf32>
    %c0_3 = arith.constant 0 : index
    %c0_4 = arith.constant 0 : index
    %4 = vector.load %arg3[%c0_3, %c0_4] : memref<1x128xf32, #tpu.memory_space<vmem>>, vector<1x128xf32>
    %5 = vector.broadcast %4 : vector<1x128xf32> to vector<128x128xf32>
    %6 = arith.addf %3, %5 : vector<128x128xf32>
    %c0_5 = arith.constant 0 : index
    %c0_6 = arith.constant 0 : index
    %7 = vector.load %arg4[%c0_5, %c0_6] : memref<128x128xbf16, #tpu.memory_space<vmem>>, vector<128x128xbf16>
    %8 = arith.extf %7 : vector<128x128xbf16> to vector<128x128xf32>
    %9 = arith.addf %6, %8 : vector<128x128xf32>
    %cst = arith.constant 0.000000e+00 : f32
    %10 = vector.broadcast %cst : f32 to vector<128x128xf32>
    %11 = arith.maximumf %9, %10 : vector<128x128xf32>
    %12 = arith.truncf %11 : vector<128x128xf32> to vector<128x128xbf16>
    %c0_7 = arith.constant 0 : index
    %c0_8 = arith.constant 0 : index
    %13 = vector.load %arg5[%c0_7, %c0_8] : memref<128x128xbf16, #tpu.memory_space<vmem>>, vector<128x128xbf16>
    tpu.vector_store %arg5[%c0_7, %c0_8], %12 {strides = array<i32>} : memref<128x128xbf16, #tpu.memory_space<vmem>>, vector<128x128xbf16>,
    return
  }
  func.func @transform_0(%arg0: i32) -> (i32, i32) {
    %c0_i32 = arith.constant 0 : i32
    %c0_i32_0 = arith.constant 0 : i32
    return %arg0, %c0_i32 : i32, i32
  }
  func.func @transform_1(%arg0: i32) -> (i32, i32) {
    %c0_i32 = arith.constant 0 : i32
    %c0_i32_0 = arith.constant 0 : i32
    %c0_i32_1 = arith.constant 0 : i32
    return %c0_i32, %c0_i32_0 : i32, i32
  }
  func.func @transform_2(%arg0: i32) -> (i32, i32) {
    %c0_i32 = arith.constant 0 : i32
    %c0_i32_0 = arith.constant 0 : i32
    %c0_i32_1 = arith.constant 0 : i32
    return %c0_i32, %c0_i32_0 : i32, i32
  }
  func.func @transform_3(%arg0: i32) -> (i32, i32) {
    %c0_i32 = arith.constant 0 : i32
    %c0_i32_0 = arith.constant 0 : i32
    return %arg0, %c0_i32 : i32, i32
  }
  func.func @transform_4(%arg0: i32) -> (i32, i32) {
    %c0_i32 = arith.constant 0 : i32
    %c0_i32_0 = arith.constant 0 : i32
    return %arg0, %c0_i32 : i32, i32
  }
}

module attributes {stable_mosaic.version = 11 : i64} {
  func.func @kernel(%arg0: i32, %arg1: memref<128x128xf32, #tpu.memory_space<vmem>>, %arg2: memref<1x128xf32, #tpu.memory_space<vmem>>, %arg3: memref<1x128xf32, #tpu.memory_space<vmem>>, %arg4: memref<128x128xbf16, #tpu.memory_space<vmem>>) attributes {dimension_semantics = [#tpu.dimension_semantics<parallel>], iteration_bounds = array<i64: 1>, scalar_prefetch = 0 : i64, scratch_operands = 0 : i64, tpu.core_type = #tpu.core_type<tc>, window_params = [{transform_indices = @transform_0, window_bounds = array<i64: 128, 128>}, {pipeline_mode = #tpu.pipeline_mode<synchronous>, transform_indices = @transform_1, window_bounds = array<i64: 1, 128>}, {pipeline_mode = #tpu.pipeline_mode<synchronous>, transform_indices = @transform_2, window_bounds = array<i64: 1, 128>}, {transform_indices = @transform_3, window_bounds = array<i64: 128, 128>}]} {
    %c0 = arith.constant 0 : index
    %c0_0 = arith.constant 0 : index
    %0 = vector.load %arg1[%c0, %c0_0] : memref<128x128xf32, #tpu.memory_space<vmem>>, vector<128x128xf32>
    %c0_1 = arith.constant 0 : index
    %c0_2 = arith.constant 0 : index
    %1 = vector.load %arg2[%c0_1, %c0_2] : memref<1x128xf32, #tpu.memory_space<vmem>>, vector<1x128xf32>
    %2 = vector.broadcast %1 : vector<1x128xf32> to vector<128x128xf32>
    %3 = arith.mulf %0, %2 : vector<128x128xf32>
    %c0_3 = arith.constant 0 : index
    %c0_4 = arith.constant 0 : index
    %4 = vector.load %arg3[%c0_3, %c0_4] : memref<1x128xf32, #tpu.memory_space<vmem>>, vector<1x128xf32>
    %5 = vector.broadcast %4 : vector<1x128xf32> to vector<128x128xf32>
    %6 = arith.addf %3, %5 : vector<128x128xf32>
    %7 = arith.truncf %6 : vector<128x128xf32> to vector<128x128xbf16>
    %c0_5 = arith.constant 0 : index
    %c0_6 = arith.constant 0 : index
    %8 = vector.load %arg4[%c0_5, %c0_6] : memref<128x128xbf16, #tpu.memory_space<vmem>>, vector<128x128xbf16>
    tpu.vector_store %arg4[%c0_5, %c0_6], %7 {strides = array<i32>} : memref<128x128xbf16, #tpu.memory_space<vmem>>, vector<128x128xbf16>,
    return
  }
  func.func @transform_0(%arg0: i32) -> (i32, i32) {
    %c0_i32 = arith.constant 0 : i32
    %c0_i32_0 = arith.constant 0 : i32
    return %arg0, %c0_i32 : i32, i32
  }
  func.func @transform_1(%arg0: i32) -> (i32, i32) {
    %c0_i32 = arith.constant 0 : i32
    %c0_i32_0 = arith.constant 0 : i32
    %c0_i32_1 = arith.constant 0 : i32
    return %c0_i32, %c0_i32_0 : i32, i32
  }
  func.func @transform_2(%arg0: i32) -> (i32, i32) {
    %c0_i32 = arith.constant 0 : i32
    %c0_i32_0 = arith.constant 0 : i32
    %c0_i32_1 = arith.constant 0 : i32
    return %c0_i32, %c0_i32_0 : i32, i32
  }
  func.func @transform_3(%arg0: i32) -> (i32, i32) {
    %c0_i32 = arith.constant 0 : i32
    %c0_i32_0 = arith.constant 0 : i32
    return %arg0, %c0_i32 : i32, i32
  }
}

</mosaic_0001>

<bundles_post_ra>
// kernel: fwd.11
= control target key start
LH: loop header
LB: loop body
LE: loop exit
PB: predicated region body
PF: predicated region fallthrough
CT: control target
= control target key end

     0   :  { %s391_s0 = inlined_call_operand.vmem [shape: f32[128,128], index: 0, kind: input, shape index: {}]   ;;  %s392_s1 = inlined_call_operand.vmem [shape: f32[1,128], index: 1, kind: input, shape index: {}]   ;;  %s393_s2 = inlined_call_operand.vmem [shape: f32[1,128], index: 2, kind: input, shape index: {}]   ;;  %s394_s3 = inlined_call_operand.vmem [shape: bf16[128,128], index: 3, kind: output, shape index: {}]  }
   0x1   :  { %v14_v0 = vld [vmem:[%s391_s0] sm:$0xff]  ;;  %v15_v1 = vld [vmem:[%s391_s0 + $0x8] sm:$0xff]  ;;  %v16_v6 = vld [vmem:[%s391_s0 + $0x10] sm:$0xff] }
   0x2   :  { %v286_v2 = vld [vmem:[%s392_s1] ss:$0 sm:$0xff]  ;;  %v17_v7 = vld [vmem:[%s391_s0 + $0x18] sm:$0xff]  ;;  %v19_v11 = vld [vmem:[%s391_s0 + $0x28] sm:$0xff] }
   0x3   :  { %v37_v3 = vmul.f32 %v286_v2, %v14_v0  ;;  %v38_v4 = vmul.f32 %v286_v2, %v15_v1  ;;  %v293_v5 = vld [vmem:[%s393_s2] ss:$0 sm:$0xff]  ;;  %v39_v8 = vmul.f32 %v286_v2, %v16_v6  ;;  %v40_v9 = vmul.f32 %v286_v2, %v17_v7  ;;  %v20_v12 = vld [vmem:[%s391_s0 + $0x30] sm:$0xff]  ;;  %v21_v17 = vld [vmem:[%s391_s0 + $0x38] sm:$0xff] }
   0x4   :  { %v18_v10 = vld [vmem:[%s391_s0 + $0x20] sm:$0xff]  ;;  %v42_v16 = vmul.f32 %v286_v2, %v19_v11  ;;  %v43_v20 = vmul.f32 %v286_v2, %v20_v12  ;;  %v44_v21 = vmul.f32 %v286_v2, %v21_v17  ;;  %v23_v27 = vld [vmem:[%s391_s0 + $0x48] sm:$0xff]  ;;  %v24_v32 = vld [vmem:[%s391_s0 + $0x50] sm:$0xff] }
   0x5   :  { %v60_v13 = vadd.f32 %v293_v5, %v37_v3  ;;  %v61_v14 = vadd.f32 %v293_v5, %v38_v4  ;;  %v41_v15 = vmul.f32 %v286_v2, %v18_v10  ;;  %v62_v18 = vadd.f32 %v293_v5, %v39_v8  ;;  %v22_v22 = vld [vmem:[%s391_s0 + $0x40] sm:$0xff]  ;;  %v25_v33 = vld [vmem:[%s391_s0 + $0x58] sm:$0xff]  ;;  %v27_v39 = vld [vmem:[%s391_s0 + $0x68] sm:$0xff] }
   0x6   :  { %v63_v19 = vadd.f32 %v293_v5, %v40_v9  ;;  %v65_v26 = vadd.f32 %v293_v5, %v42_v16  ;;  %v66_v30 = vadd.f32 %v293_v5, %v43_v20  ;;  %v67_v31 = vadd.f32 %v293_v5, %v44_v21  ;;  %v26_v38 = vld [vmem:[%s391_s0 + $0x60] sm:$0xff]  ;;  %v28_v44 = vld [vmem:[%s391_s0 + $0x70] sm:$0xff]  ;;  %v29_v49 = vld [vmem:[%s391_s0 + $0x78] sm:$0xff] }
   0x7   :  { %v76_v23 = vmax.f32 %v60_v13, 0.0  ;;  %v77_v24 = vmax.f32 %v61_v14, 0.0  ;;  %v64_v25 = vadd.f32 %v293_v5, %v41_v15  ;;  %v78_v28 = vmax.f32 %v62_v18, 0.0 }
   0x8   :  { %v79_v29 = vmax.f32 %v63_v19, 0.0  ;;  %v81_v36 = vmax.f32 %v65_v26, 0.0  ;;  %v45_v37 = vmul.f32 %v286_v2, %v22_v22  ;;  %v82_v41 = vmax.f32 %v66_v30, 0.0 }
   0x9   :  { %v213_v34 = vpack.c.bf16 %v77_v24, %v76_v23  ;;  %v80_v35 = vmax.f32 %v64_v25, 0.0  ;;  %v83_v42 = vmax.f32 %v67_v31, 0.0  ;;  %v46_v43 = vmul.f32 %v286_v2, %v23_v27 }
   0xa   :  { %v218_v40 = vpack.c.bf16 %v79_v29, %v78_v28  ;;  %v68_v46 = vadd.f32 %v293_v5, %v45_v37  ;;  %v47_v47 = vmul.f32 %v286_v2, %v24_v32  ;;  %v48_v48 = vmul.f32 %v286_v2, %v25_v33 }
   0xb   :  { %214 = vst [vmem:[%s394_s3] sm:$0xff] %v213_v34   ;;  %v223_v45 = vpack.c.bf16 %v81_v36, %v80_v35  ;;  %v228_v50 = vpack.c.bf16 %v83_v42, %v82_v41  ;;  %v69_v51 = vadd.f32 %v293_v5, %v46_v43  ;;  %v49_v52 = vmul.f32 %v286_v2, %v26_v38 }
   0xc   :  { %250 = vst [vmem:[%s394_s3 + $0x8] sm:$0xff] %v218_v40   ;;  %v50_v53 = vmul.f32 %v286_v2, %v27_v39  ;;  %v84_v54 = vmax.f32 %v68_v46, 0.0  ;;  %v70_v55 = vadd.f32 %v293_v5, %v47_v47  ;;  %v71_v56 = vadd.f32 %v293_v5, %v48_v48 }
   0xd   :  { %251 = vst [vmem:[%s394_s3 + $0x10] sm:$0xff] %v223_v45   ;;  %v51_v57 = vmul.f32 %v286_v2, %v28_v44  ;;  %252 = vst [vmem:[%s394_s3 + $0x18] sm:$0xff] %v228_v50   ;;  %v85_v58 = vmax.f32 %v69_v51, 0.0  ;;  %v72_v59 = vadd.f32 %v293_v5, %v49_v52  ;;  %v52_v61 = vmul.f32 %v286_v2, %v29_v49 }
   0xe   :  { %v73_v60 = vadd.f32 %v293_v5, %v50_v53  ;;  %v86_v62 = vmax.f32 %v70_v55, 0.0  ;;  %v87_v63 = vmax.f32 %v71_v56, 0.0 }
   0xf   :  { %v74_v0 = vadd.f32 %v293_v5, %v51_v57  ;;  %v233_v1 = vpack.c.bf16 %v85_v58, %v84_v54  ;;  %v88_v3 = vmax.f32 %v72_v59, 0.0  ;;  %v75_v6 = vadd.f32 %v293_v5, %v52_v61 }
  0x10   :  { %v89_v4 = vmax.f32 %v73_v60, 0.0  ;;  %v238_v7 = vpack.c.bf16 %v87_v63, %v86_v62 }
  0x11   :  { %v90_v8 = vmax.f32 %v74_v0, 0.0  ;;  %253 = vst [vmem:[%s394_s3 + $0x20] sm:$0xff] %v233_v1   ;;  %v91_v10 = vmax.f32 %v75_v6, 0.0 }
  0x12   :  { %v243_v9 = vpack.c.bf16 %v89_v4, %v88_v3  ;;  %254 = vst [vmem:[%s394_s3 + $0x28] sm:$0xff] %v238_v7  }
  0x13   :  { %v248_v2 = vpack.c.bf16 %v91_v10, %v90_v8 }
  0x14   :  { %255 = vst [vmem:[%s394_s3 + $0x30] sm:$0xff] %v243_v9  }
  0x15   :  { %256 = vst [vmem:[%s394_s3 + $0x38] sm:$0xff] %v248_v2  }

// kernel: fwd.10
= control target key start
LH: loop header
LB: loop body
LE: loop exit
PB: predicated region body
PF: predicated region fallthrough
CT: control target
= control target key end

     0   :  { %vm400_vm0 = vcmask 1040384   ;;  %s626_s1 = inlined_call_operand.vmem [shape: bf16[128,128], index: 1, kind: input, shape index: {}]   ;;  %s627_s0 = inlined_call_operand.vmem [shape: bf16[128,128], index: 0, kind: input, shape index: {}]   ;;  %s628_s2 = inlined_call_operand.vmem [shape: f32[128,128], index: 2, kind: output, shape index: {0}]   ;;  %s629_s3 = inlined_call_operand.vmem [shape: f32[1,2,128], index: 3, kind: output, shape index: {1}]  }
   0x1   :  { %v491_v0 = vld [vmem:[%s626_s1] sm:$0xff]   ;;  %v492_v1 = vld [vmem:[%s626_s1 + $0x8] sm:$0xff]   ;;  %v493_v2 = vld [vmem:[%s626_s1 + $0x10] sm:$0xff]  }
   0x2   :  { %443 = vmatprep.subr.bf16.mxu0 %v491_v0  ;;  %475 = vmatprep.subr.bf16.mxu1 %v491_v0  ;;  %v494_v3 = vld [vmem:[%s626_s1 + $0x18] sm:$0xff]   ;;  %v499_v4 = vld [vmem:[%s627_s0] sm:$0xff]   ;;  %v496_v7 = vld [vmem:[%s626_s1 + $0x28] sm:$0xff]  }
   0x3   :  { %444 = vmatpush3.bf16.msra.mxu0 %v491_v0  ;;  %483 = vmatpush3.bf16.msra.mxu1 %v491_v0  ;;  %v495_v5 = vld [vmem:[%s626_s1 + $0x20] sm:$0xff]   ;;  %v497_v8 = vld [vmem:[%s626_s1 + $0x30] sm:$0xff]   ;;  %v498_v9 = vld [vmem:[%s626_s1 + $0x38] sm:$0xff]  }
   0x4   :  { %445 = vmatprep.subr.bf16.mxu0 %v492_v1  ;;  %476 = vmatprep.subr.bf16.mxu1 %v492_v1  ;;  %v503_v6 = vld [vmem:[%s627_s0 + $0x20] sm:$0xff]   ;;  %v500_v10 = vld [vmem:[%s627_s0 + $0x8] sm:$0xff]   ;;  %v501_v12 = vld [vmem:[%s627_s0 + $0x10] sm:$0xff]  }
   0x5   :  { %459 = vmatprep.mubr.bf16.mxu0 %v499_v4  ;;  %467 = vmatprep.mubr.bf16.mxu1 %v503_v6  ;;  %v504_v11 = vld [vmem:[%s627_s0 + $0x28] sm:$0xff]   ;;  %v505_v13 = vld [vmem:[%s627_s0 + $0x30] sm:$0xff]   ;;  %v502_v14 = vld [vmem:[%s627_s0 + $0x18] sm:$0xff]  }
   0x6   :  { %v506_v15 = vld [vmem:[%s627_s0 + $0x38] sm:$0xff]  }
   0x7   :  { %446 = vmatpush3.bf16.msra.mxu0 %v492_v1  ;;  %484 = vmatpush3.bf16.msra.mxu1 %v492_v1 }
   0x8   :  { %447 = vmatprep.subr.bf16.mxu0 %v493_v2  ;;  %477 = vmatprep.subr.bf16.mxu1 %v493_v2 }
   0xb   :  { %448 = vmatpush3.bf16.msra.mxu0 %v493_v2  ;;  %485 = vmatpush3.bf16.msra.mxu1 %v493_v2 }
   0xc   :  { %449 = vmatprep.subr.bf16.mxu0 %v494_v3  ;;  %478 = vmatprep.subr.bf16.mxu1 %v494_v3 }
   0xf   :  { %450 = vmatpush3.bf16.msra.mxu0 %v494_v3  ;;  %486 = vmatpush3.bf16.msra.mxu1 %v494_v3 }
  0x10   :  { %451 = vmatprep.subr.bf16.mxu0 %v495_v5  ;;  %479 = vmatprep.subr.bf16.mxu1 %v495_v5 }
  0x13   :  { %452 = vmatpush3.bf16.msra.mxu0 %v495_v5  ;;  %487 = vmatpush3.bf16.msra.mxu1 %v495_v5 }
  0x14   :  { %453 = vmatprep.subr.bf16.mxu0 %v496_v7  ;;  %480 = vmatprep.subr.bf16.mxu1 %v496_v7 }
  0x17   :  { %454 = vmatpush3.bf16.msra.mxu0 %v496_v7  ;;  %488 = vmatpush3.bf16.msra.mxu1 %v496_v7 }
  0x18   :  { %455 = vmatprep.subr.bf16.mxu0 %v497_v8  ;;  %481 = vmatprep.subr.bf16.mxu1 %v497_v8 }
  0x1b   :  { %456 = vmatpush3.bf16.msra.mxu0 %v497_v8  ;;  %489 = vmatpush3.bf16.msra.mxu1 %v497_v8 }
  0x1c   :  { %457 = vmatprep.subr.bf16.mxu0 %v498_v9  ;;  %482 = vmatprep.subr.bf16.mxu1 %v498_v9 }
  0x1f   :  { %458 = vmatpush3.bf16.msra.mxu0 %v498_v9  ;;  %490 = vmatpush3.bf16.msra.mxu1 %v498_v9 }
  0x22   :  { %460 = vmatmul.mubr.bf16.vlgmr.msra.gmra.mrb[0].mxu0 %v500_v10  ;;  %468 = vmatmul.mubr.bf16.vlgmr.msra.gmra.mrb[0].mxu1 %v504_v11 }
  0x23   :  { %463 = vmatprep.mubr.bf16.mxu0 %v501_v12  ;;  %471 = vmatprep.mubr.bf16.mxu1 %v505_v13 }
  0x2a   :  { %464 = vmatmul.mubr.bf16.gmra.mrb[4].mxu0 %v502_v14  ;;  %472 = vmatmul.mubr.bf16.gmra.mrb[4].mxu1 %v506_v15 }
  0xf5   :  { %v461_v16 = vpop.f32.mrb[0].mxu0  ;;  %v469_v17 = vpop.f32.mrb[0].mxu1 }
  0xf6   :  { %328 = vst [vmem:[%s628_s2 + $0x10] sm:$0xff] %v461_v16  ;;  %v212_v18 = vpop.f32.mrb[1].mxu0  ;;  %336 = vst [vmem:[%s628_s2 + $0x50] sm:$0xff] %v469_v17  ;;  %v244_v19 = vpop.f32.mrb[1].mxu1  ;;  %v365_v27 = vmul.f32 %v461_v16, %v461_v16  ;;  %v373_v59 = vmul.f32 %v469_v17, %v469_v17 }
  0xf7   :  { %326 = vst [vmem:[%s628_s2] sm:$0xff] %v212_v18  ;;  %v462_v20 = vpop.f32.mrb[2].mxu0  ;;  %334 = vst [vmem:[%s628_s2 + $0x40] sm:$0xff] %v244_v19  ;;  %v470_v21 = vpop.f32.mrb[2].mxu1  ;;  %v363_v24 = vmul.f32 %v212_v18, %v212_v18  ;;  %v371_v53 = vmul.f32 %v244_v19, %v244_v19 }
  0xf8   :  { %329 = vst [vmem:[%s628_s2 + $0x18] sm:$0xff] %v462_v20  ;;  %v215_v22 = vpop.f32.mrb[3].mxu0  ;;  %337 = vst [vmem:[%s628_s2 + $0x58] sm:$0xff] %v470_v21  ;;  %v247_v23 = vpop.f32.mrb[3].mxu1  ;;  %v366_v30 = vmul.f32 %v462_v20, %v462_v20  ;;  %v374_v62 = vmul.f32 %v470_v21, %v470_v21 }
  0xf9   :  { %327 = vst [vmem:[%s628_s2 + $0x8] sm:$0xff] %v215_v22  ;;  %v342_v25 = vadd.f32 %v215_v22, %v212_v18  ;;  %v364_v26 = vmul.f32 %v215_v22, %v215_v22  ;;  %335 = vst [vmem:[%s628_s2 + $0x48] sm:$0xff] %v247_v23  ;;  %v372_v58 = vmul.f32 %v247_v23, %v247_v23 }
  0xfb   :  { %v343_v28 = vadd.f32 %v461_v16, %v342_v25  ;;  %v379_v29 = vadd.f32 %v364_v26, %v363_v24 }
  0xfd   :  { %v380_v31 = vadd.f32 %v379_v29, %v365_v27  ;;  %v465_v32 = vpop.f32.mrb[4].mxu0  ;;  %v344_v33 = vadd.f32 %v462_v20, %v343_v28  ;;  %v473_v34 = vpop.f32.mrb[4].mxu1 }
  0xfe   :  { %332 = vst [vmem:[%s628_s2 + $0x30] sm:$0xff] %v465_v32  ;;  %v228_v35 = vpop.f32.mrb[5].mxu0  ;;  %340 = vst [vmem:[%s628_s2 + $0x70] sm:$0xff] %v473_v34  ;;  %v260_v36 = vpop.f32.mrb[5].mxu1  ;;  %v369_v47 = vmul.f32 %v465_v32, %v465_v32  ;;  %v377_v7 = vmul.f32 %v473_v34, %v473_v34 }
  0xff   :  { %330 = vst [vmem:[%s628_s2 + $0x20] sm:$0xff] %v228_v35  ;;  %v345_v37 = vadd.f32 %v344_v33, %v228_v35  ;;  %v367_v38 = vmul.f32 %v228_v35, %v228_v35  ;;  %v381_v39 = vadd.f32 %v380_v31, %v366_v30  ;;  %v466_v40 = vpop.f32.mrb[6].mxu0  ;;  %338 = vst [vmem:[%s628_s2 + $0x60] sm:$0xff] %v260_v36  ;;  %v474_v41 = vpop.f32.mrb[6].mxu1 }
 0x100   :  { %333 = vst [vmem:[%s628_s2 + $0x38] sm:$0xff] %v466_v40  ;;  %v231_v42 = vpop.f32.mrb[7].mxu0  ;;  %341 = vst [vmem:[%s628_s2 + $0x78] sm:$0xff] %v474_v41  ;;  %v263_v43 = vpop.f32.mrb[7].mxu1  ;;  %v370_v50 = vmul.f32 %v466_v40, %v466_v40  ;;  %v375_v1 = vmul.f32 %v260_v36, %v260_v36  ;;  %v378_v10 = vmul.f32 %v474_v41, %v474_v41 }
 0x101   :  { %v382_v44 = vadd.f32 %v381_v39, %v367_v38  ;;  %331 = vst [vmem:[%s628_s2 + $0x28] sm:$0xff] %v231_v42  ;;  %v346_v45 = vadd.f32 %v345_v37, %v231_v42  ;;  %v368_v46 = vmul.f32 %v231_v42, %v231_v42  ;;  %339 = vst [vmem:[%s628_s2 + $0x68] sm:$0xff] %v263_v43 }
 0x102   :  { %v376_v6 = vmul.f32 %v263_v43, %v263_v43 }
 0x103   :  { %v347_v48 = vadd.f32 %v465_v32, %v346_v45  ;;  %v383_v49 = vadd.f32 %v382_v44, %v368_v46 }
 0x105   :  { %v384_v51 = vadd.f32 %v383_v49, %v369_v47  ;;  %v348_v52 = vadd.f32 %v466_v40, %v347_v48 }
 0x107   :  { %v349_v54 = vadd.f32 %v348_v52, %v244_v19  ;;  %v385_v55 = vadd.f32 %v384_v51, %v370_v50 }
 0x109   :  { %v386_v56 = vadd.f32 %v385_v55, %v371_v53  ;;  %v350_v57 = vadd.f32 %v349_v54, %v247_v23 }
 0x10b   :  { %v351_v60 = vadd.f32 %v469_v17, %v350_v57  ;;  %v387_v61 = vadd.f32 %v386_v56, %v372_v58 }
 0x10d   :  { %v388_v63 = vadd.f32 %v387_v61, %v373_v59  ;;  %v352_v0 = vadd.f32 %v470_v21, %v351_v60 }
 0x10f   :  { %v353_v2 = vadd.f32 %v352_v0, %v260_v36  ;;  %v389_v3 = vadd.f32 %v388_v63, %v374_v62 }
 0x111   :  { %v390_v4 = vadd.f32 %v389_v3, %v375_v1  ;;  %v354_v5 = vadd.f32 %v353_v2, %v263_v43 }
 0x113   :  { %v355_v8 = vadd.f32 %v473_v34, %v354_v5  ;;  %v391_v9 = vadd.f32 %v390_v4, %v376_v6 }
 0x115   :  { %v356_v11 = vadd.f32 %v474_v41, %v355_v8  ;;  %v392_v12 = vadd.f32 %v391_v9, %v377_v7 }
 0x117   :  { %v357_v13 = vrot.slane %v356_v11, 4  ;;  %v393_v14 = vadd.f32 %v392_v12, %v378_v10 }
 0x119   :  { %v358_v15 = vadd.f32 %v357_v13, %v356_v11  ;;  %v394_v16 = vrot.slane %v393_v14, 4 }
 0x11b   :  { %v359_v17 = vrot.slane %v358_v15, 2  ;;  %v395_v18 = vadd.f32 %v394_v16, %v393_v14 }
 0x11d   :  { %v360_v19 = vadd.f32 %v359_v17, %v358_v15  ;;  %v396_v20 = vrot.slane %v395_v18, 2 }
 0x11f   :  { %v361_v21 = vrot.slane %v360_v19, 1  ;;  %v397_v22 = vadd.f32 %v396_v20, %v395_v18 }
 0x121   :  { %v398_v23 = vrot.slane %v397_v22, 1  ;;  %v362_v24 = vadd.f32 %v361_v21, %v360_v19 }
 0x123   :  { %v399_v25 = vadd.f32 %v398_v23, %v397_v22 }
 0x125   :  { %v401_v26 = vsel %vm400_vm0, %v362_v24, %v399_v25 }
 0x126   :  { %402 = vst [vmem:[%s629_s3] sm:$0x3] %v401_v26 }

// kernel: fwd.15
= control target key start
LH: loop header
LB: loop body
LE: loop exit
PB: predicated region body
PF: predicated region fallthrough
CT: control target
= control target key end

     0   :  { %s510_s0 = inlined_call_operand.vmem [shape: f32[128,128], index: 0, kind: input, shape index: {}]   ;;  %s511_s1 = inlined_call_operand.vmem [shape: f32[1,128], index: 1, kind: input, shape index: {}]   ;;  %s512_s2 = inlined_call_operand.vmem [shape: f32[1,128], index: 2, kind: input, shape index: {}]   ;;  %s513_s3 = inlined_call_operand.vmem [shape: bf16[128,128], index: 3, kind: input, shape index: {}]   ;;  %s514_s4 = inlined_call_operand.vmem [shape: bf16[128,128], index: 4, kind: output, shape index: {}]  }
   0x1   :  { %v17_v0 = vld [vmem:[%s510_s0] sm:$0xff]  ;;  %v18_v1 = vld [vmem:[%s510_s0 + $0x8] sm:$0xff]  ;;  %v19_v7 = vld [vmem:[%s510_s0 + $0x10] sm:$0xff] }
   0x2   :  { %v381_v2 = vld [vmem:[%s511_s1] ss:$0 sm:$0xff]  ;;  %v20_v10 = vld [vmem:[%s510_s0 + $0x18] sm:$0xff]  ;;  %v333_v12 = vld [vmem:[%s513_s3 + $0x8] sm:$0xff]  }
   0x3   :  { %v40_v3 = vmul.f32 %v381_v2, %v17_v0  ;;  %v41_v4 = vmul.f32 %v381_v2, %v18_v1  ;;  %v388_v5 = vld [vmem:[%s512_s2] ss:$0 sm:$0xff]  ;;  %v42_v11 = vmul.f32 %v381_v2, %v19_v7  ;;  %v43_v16 = vmul.f32 %v381_v2, %v20_v10  ;;  %v22_v18 = vld [vmem:[%s510_s0 + $0x28] sm:$0xff]  ;;  %v334_v19 = vld [vmem:[%s513_s3 + $0x10] sm:$0xff]  }
   0x4   :  { %v262_v6 = vld [vmem:[%s513_s3] sm:$0xff]   ;;  %v267_v17 = vunpack.c.l.bf16 %v333_v12  ;;  %v268_v21 = vunpack.c.h.bf16 %v333_v12  ;;  %v45_v23 = vmul.f32 %v381_v2, %v22_v18  ;;  %v23_v24 = vld [vmem:[%s510_s0 + $0x30] sm:$0xff]  ;;  %v271_v28 = vunpack.c.l.bf16 %v334_v19  ;;  %v24_v29 = vld [vmem:[%s510_s0 + $0x38] sm:$0xff] }
   0x5   :  { %v263_v8 = vunpack.c.l.bf16 %v262_v6  ;;  %v264_v9 = vunpack.c.h.bf16 %v262_v6  ;;  %v21_v13 = vld [vmem:[%s510_s0 + $0x20] sm:$0xff]  ;;  %v63_v14 = vadd.f32 %v388_v5, %v40_v3  ;;  %v64_v15 = vadd.f32 %v388_v5, %v41_v4  ;;  %v335_v34 = vld [vmem:[%s513_s3 + $0x18] sm:$0xff]   ;;  %v26_v44 = vld [vmem:[%s510_s0 + $0x48] sm:$0xff] }
   0x6   :  { %v65_v20 = vadd.f32 %v388_v5, %v42_v11  ;;  %v44_v22 = vmul.f32 %v381_v2, %v21_v13  ;;  %v66_v27 = vadd.f32 %v388_v5, %v43_v16  ;;  %v68_v32 = vadd.f32 %v388_v5, %v45_v23  ;;  %v25_v43 = vld [vmem:[%s510_s0 + $0x40] sm:$0xff]  ;;  %v27_v54 = vld [vmem:[%s510_s0 + $0x50] sm:$0xff]  ;;  %v28_v59 = vld [vmem:[%s510_s0 + $0x58] sm:$0xff] }
   0x7   :  { %v111_v25 = vadd.f32 %v263_v8, %v63_v14  ;;  %v112_v26 = vadd.f32 %v264_v9, %v64_v15  ;;  %v272_v33 = vunpack.c.h.bf16 %v334_v19  ;;  %v46_v38 = vmul.f32 %v381_v2, %v23_v24  ;;  %v336_v49 = vld [vmem:[%s513_s3 + $0x20] sm:$0xff]   ;;  %v337_v60 = vld [vmem:[%s513_s3 + $0x28] sm:$0xff]   ;;  %v338_v9 = vld [vmem:[%s513_s3 + $0x30] sm:$0xff]  }
   0x8   :  { %v113_v30 = vadd.f32 %v267_v17, %v65_v20  ;;  %v67_v31 = vadd.f32 %v388_v5, %v44_v22  ;;  %v114_v37 = vadd.f32 %v268_v21, %v66_v27  ;;  %v47_v42 = vmul.f32 %v381_v2, %v24_v29  ;;  %v29_v1 = vld [vmem:[%s510_s0 + $0x60] sm:$0xff]  ;;  %v30_v8 = vld [vmem:[%s510_s0 + $0x68] sm:$0xff]  ;;  %v31_v18 = vld [vmem:[%s510_s0 + $0x70] sm:$0xff] }
   0x9   :  { %v127_v35 = vmax.f32 %v111_v25, 0.0  ;;  %v128_v36 = vmax.f32 %v112_v26, 0.0  ;;  %v116_v41 = vadd.f32 %v272_v33, %v68_v32  ;;  %v69_v47 = vadd.f32 %v388_v5, %v46_v38  ;;  %v32_v23 = vld [vmem:[%s510_s0 + $0x78] sm:$0xff] }
   0xa   :  { %v129_v39 = vmax.f32 %v113_v30, 0.0  ;;  %v115_v40 = vadd.f32 %v271_v28, %v67_v31  ;;  %v130_v46 = vmax.f32 %v114_v37, 0.0  ;;  %v275_v48 = vunpack.c.l.bf16 %v335_v34  ;;  %v339_v28 = vld [vmem:[%s513_s3 + $0x38] sm:$0xff]  }
   0xb   :  { %v296_v45 = vpack.c.bf16 %v128_v36, %v127_v35  ;;  %v132_v51 = vmax.f32 %v116_v41, 0.0  ;;  %v70_v52 = vadd.f32 %v388_v5, %v47_v42  ;;  %v276_v53 = vunpack.c.h.bf16 %v335_v34 }
   0xc   :  { %v131_v50 = vmax.f32 %v115_v40, 0.0  ;;  %v301_v55 = vpack.c.bf16 %v130_v46, %v129_v39  ;;  %v117_v56 = vadd.f32 %v275_v48, %v69_v47  ;;  %v48_v57 = vmul.f32 %v381_v2, %v25_v43 }
   0xd   :  { %297 = vst [vmem:[%s514_s4] sm:$0xff] %v296_v45   ;;  %v49_v58 = vmul.f32 %v381_v2, %v26_v44  ;;  %v118_v62 = vadd.f32 %v276_v53, %v70_v52  ;;  %v279_v63 = vunpack.c.l.bf16 %v336_v49  ;;  %v280_v0 = vunpack.c.h.bf16 %v336_v49 }
   0xe   :  { %v306_v61 = vpack.c.bf16 %v132_v51, %v131_v50  ;;  %340 = vst [vmem:[%s514_s4 + $0x8] sm:$0xff] %v301_v55   ;;  %v133_v3 = vmax.f32 %v117_v56, 0.0  ;;  %v71_v4 = vadd.f32 %v388_v5, %v48_v57  ;;  %v50_v7 = vmul.f32 %v381_v2, %v27_v54 }
   0xf   :  { %v72_v6 = vadd.f32 %v388_v5, %v49_v58  ;;  %v134_v10 = vmax.f32 %v118_v62, 0.0  ;;  %v51_v11 = vmul.f32 %v381_v2, %v28_v59  ;;  %v283_v12 = vunpack.c.l.bf16 %v337_v60 }
  0x10   :  { %341 = vst [vmem:[%s514_s4 + $0x10] sm:$0xff] %v306_v61   ;;  %v284_v13 = vunpack.c.h.bf16 %v337_v60  ;;  %v119_v14 = vadd.f32 %v279_v63, %v71_v4  ;;  %v73_v16 = vadd.f32 %v388_v5, %v50_v7  ;;  %v52_v17 = vmul.f32 %v381_v2, %v29_v1 }
  0x11   :  { %v120_v15 = vadd.f32 %v280_v0, %v72_v6  ;;  %v311_v19 = vpack.c.bf16 %v134_v10, %v133_v3  ;;  %v74_v20 = vadd.f32 %v388_v5, %v51_v11  ;;  %v53_v21 = vmul.f32 %v381_v2, %v30_v8 }
  0x12   :  { %v287_v22 = vunpack.c.l.bf16 %v338_v9  ;;  %v135_v24 = vmax.f32 %v119_v14, 0.0  ;;  %v121_v26 = vadd.f32 %v283_v12, %v73_v16  ;;  %v75_v27 = vadd.f32 %v388_v5, %v52_v17 }
  0x13   :  { %v136_v25 = vmax.f32 %v120_v15, 0.0  ;;  %342 = vst [vmem:[%s514_s4 + $0x18] sm:$0xff] %v311_v19   ;;  %v122_v29 = vadd.f32 %v284_v13, %v74_v20  ;;  %v76_v30 = vadd.f32 %v388_v5, %v53_v21  ;;  %v288_v31 = vunpack.c.h.bf16 %v338_v9 }
  0x14   :  { %v54_v32 = vmul.f32 %v381_v2, %v31_v18  ;;  %v137_v34 = vmax.f32 %v121_v26, 0.0  ;;  %v123_v35 = vadd.f32 %v287_v22, %v75_v27  ;;  %v55_v36 = vmul.f32 %v381_v2, %v32_v23 }
  0x15   :  { %v316_v33 = vpack.c.bf16 %v136_v25, %v135_v24  ;;  %v138_v37 = vmax.f32 %v122_v29, 0.0  ;;  %v124_v38 = vadd.f32 %v288_v31, %v76_v30  ;;  %v291_v40 = vunpack.c.l.bf16 %v339_v28 }
  0x16   :  { %v77_v39 = vadd.f32 %v388_v5, %v54_v32  ;;  %v139_v41 = vmax.f32 %v123_v35, 0.0  ;;  %v78_v42 = vadd.f32 %v388_v5, %v55_v36  ;;  %v292_v43 = vunpack.c.h.bf16 %v339_v28 }
  0x17   :  { %343 = vst [vmem:[%s514_s4 + $0x20] sm:$0xff] %v316_v33   ;;  %v321_v44 = vpack.c.bf16 %v138_v37, %v137_v34  ;;  %v140_v45 = vmax.f32 %v124_v38, 0.0 }
  0x18   :  { %v125_v46 = vadd.f32 %v291_v40, %v77_v39  ;;  %v126_v47 = vadd.f32 %v292_v43, %v78_v42 }
  0x19   :  { %344 = vst [vmem:[%s514_s4 + $0x28] sm:$0xff] %v321_v44   ;;  %v326_v2 = vpack.c.bf16 %v140_v45, %v139_v41 }
  0x1a   :  { %v141_v48 = vmax.f32 %v125_v46, 0.0  ;;  %v142_v49 = vmax.f32 %v126_v47, 0.0 }
  0x1b   :  { %345 = vst [vmem:[%s514_s4 + $0x30] sm:$0xff] %v326_v2  }
  0x1c   :  { %v331_v50 = vpack.c.bf16 %v142_v49, %v141_v48 }
  0x1e   :  { %346 = vst [vmem:[%s514_s4 + $0x38] sm:$0xff] %v331_v50  }

// kernel: fwd.13
= control target key start
LH: loop header
LB: loop body
LE: loop exit
PB: predicated region body
PF: predicated region fallthrough
CT: control target
= control target key end

     0   :  { %s339_s0 = inlined_call_operand.vmem [shape: f32[128,128], index: 0, kind: input, shape index: {}]   ;;  %s340_s1 = inlined_call_operand.vmem [shape: f32[1,128], index: 1, kind: input, shape index: {}]   ;;  %s341_s2 = inlined_call_operand.vmem [shape: f32[1,128], index: 2, kind: input, shape index: {}]   ;;  %s342_s3 = inlined_call_operand.vmem [shape: bf16[128,128], index: 3, kind: output, shape index: {}]  }
   0x1   :  { %v14_v0 = vld [vmem:[%s339_s0] sm:$0xff]  ;;  %v15_v1 = vld [vmem:[%s339_s0 + $0x8] sm:$0xff]  ;;  %v16_v6 = vld [vmem:[%s339_s0 + $0x10] sm:$0xff] }
   0x2   :  { %v160_v2 = vld [vmem:[%s340_s1] ss:$0 sm:$0xff]  ;;  %v17_v7 = vld [vmem:[%s339_s0 + $0x18] sm:$0xff]  ;;  %v19_v11 = vld [vmem:[%s339_s0 + $0x28] sm:$0xff] }
   0x3   :  { %v37_v3 = vmul.f32 %v160_v2, %v14_v0  ;;  %v38_v4 = vmul.f32 %v160_v2, %v15_v1  ;;  %v161_v5 = vld [vmem:[%s341_s2] ss:$0 sm:$0xff]  ;;  %v39_v8 = vmul.f32 %v160_v2, %v16_v6  ;;  %v40_v9 = vmul.f32 %v160_v2, %v17_v7  ;;  %v20_v12 = vld [vmem:[%s339_s0 + $0x30] sm:$0xff]  ;;  %v21_v17 = vld [vmem:[%s339_s0 + $0x38] sm:$0xff] }
   0x4   :  { %v18_v10 = vld [vmem:[%s339_s0 + $0x20] sm:$0xff]  ;;  %v42_v16 = vmul.f32 %v160_v2, %v19_v11  ;;  %v23_v19 = vld [vmem:[%s339_s0 + $0x48] sm:$0xff]  ;;  %v43_v22 = vmul.f32 %v160_v2, %v20_v12  ;;  %v44_v23 = vmul.f32 %v160_v2, %v21_v17  ;;  %v24_v24 = vld [vmem:[%s339_s0 + $0x50] sm:$0xff] }
   0x5   :  { %v60_v13 = vadd.f32 %v161_v5, %v37_v3  ;;  %v61_v14 = vadd.f32 %v161_v5, %v38_v4  ;;  %v41_v15 = vmul.f32 %v160_v2, %v18_v10  ;;  %v22_v18 = vld [vmem:[%s339_s0 + $0x40] sm:$0xff]  ;;  %v62_v20 = vadd.f32 %v161_v5, %v39_v8  ;;  %v25_v25 = vld [vmem:[%s339_s0 + $0x58] sm:$0xff]  ;;  %v27_v31 = vld [vmem:[%s339_s0 + $0x68] sm:$0xff] }
   0x6   :  { %v63_v21 = vadd.f32 %v161_v5, %v40_v9  ;;  %v65_v28 = vadd.f32 %v161_v5, %v42_v16  ;;  %v45_v29 = vmul.f32 %v160_v2, %v22_v18  ;;  %v26_v30 = vld [vmem:[%s339_s0 + $0x60] sm:$0xff]  ;;  %v66_v33 = vadd.f32 %v161_v5, %v43_v22  ;;  %v28_v36 = vld [vmem:[%s339_s0 + $0x70] sm:$0xff]  ;;  %v29_v37 = vld [vmem:[%s339_s0 + $0x78] sm:$0xff] }
   0x7   :  { %v197_v26 = vpack.c.bf16 %v61_v14, %v60_v13  ;;  %v64_v27 = vadd.f32 %v161_v5, %v41_v15  ;;  %v67_v34 = vadd.f32 %v161_v5, %v44_v23  ;;  %v46_v35 = vmul.f32 %v160_v2, %v23_v19 }
   0x8   :  { %v202_v32 = vpack.c.bf16 %v63_v21, %v62_v20  ;;  %v68_v39 = vadd.f32 %v161_v5, %v45_v29  ;;  %v47_v40 = vmul.f32 %v160_v2, %v24_v24  ;;  %v48_v41 = vmul.f32 %v160_v2, %v25_v25 }
   0x9   :  { %198 = vst [vmem:[%s342_s3] sm:$0xff] %v197_v26   ;;  %v207_v38 = vpack.c.bf16 %v65_v28, %v64_v27  ;;  %v212_v42 = vpack.c.bf16 %v67_v34, %v66_v33  ;;  %v69_v43 = vadd.f32 %v161_v5, %v46_v35  ;;  %v49_v44 = vmul.f32 %v160_v2, %v26_v30 }
   0xa   :  { %234 = vst [vmem:[%s342_s3 + $0x8] sm:$0xff] %v202_v32   ;;  %v50_v45 = vmul.f32 %v160_v2, %v27_v31  ;;  %v70_v46 = vadd.f32 %v161_v5, %v47_v40  ;;  %v71_v47 = vadd.f32 %v161_v5, %v48_v41  ;;  %v51_v48 = vmul.f32 %v160_v2, %v28_v36 }
   0xb   :  { %235 = vst [vmem:[%s342_s3 + $0x10] sm:$0xff] %v207_v38   ;;  %v52_v49 = vmul.f32 %v160_v2, %v29_v37  ;;  %236 = vst [vmem:[%s342_s3 + $0x18] sm:$0xff] %v212_v42   ;;  %v217_v50 = vpack.c.bf16 %v69_v43, %v68_v39  ;;  %v72_v51 = vadd.f32 %v161_v5, %v49_v44 }
   0xc   :  { %v73_v52 = vadd.f32 %v161_v5, %v50_v45  ;;  %v222_v53 = vpack.c.bf16 %v71_v47, %v70_v46  ;;  %v74_v54 = vadd.f32 %v161_v5, %v51_v48 }
   0xd   :  { %v75_v55 = vadd.f32 %v161_v5, %v52_v49  ;;  %237 = vst [vmem:[%s342_s3 + $0x20] sm:$0xff] %v217_v50  }
   0xe   :  { %v227_v56 = vpack.c.bf16 %v73_v52, %v72_v51  ;;  %238 = vst [vmem:[%s342_s3 + $0x28] sm:$0xff] %v222_v53  }
   0xf   :  { %v232_v57 = vpack.c.bf16 %v75_v55, %v74_v54 }
  0x10   :  { %239 = vst [vmem:[%s342_s3 + $0x30] sm:$0xff] %v227_v56  }
  0x11   :  { %240 = vst [vmem:[%s342_s3 + $0x38] sm:$0xff] %v232_v57  }

</bundles_post_ra>
